<compile_context>
chip_gen: v5e
topology: v5e:2x2
jax: 0.10.0
libtpu: 0.0.40
codegen_flags: <defaults>
</compile_context>

<pallas_src>
import math
import jax
import jax.numpy as jnp
from jax.experimental import pallas as pl
from jax.experimental.pallas import tpu as pltpu

_LANE = 128
_SUBLANE = 8


def _round_up(x, m):
    return ((x + m - 1) // m) * m


def _maybe_pad(a, pads):
    if all(lo == 0 and hi == 0 for lo, hi in pads):
        return a
    return jnp.pad(a, pads)


def _vmem_capacity_bytes():
    """Physical VMEM per TensorCore; conservative fallback if not queryable."""
    default = 64 * 1024 * 1024  # v7x per-TC
    try:
        info = pltpu.get_tpu_info()
        return int(getattr(info, "vmem_capacity_bytes", default))
    except Exception:
        return default


def sinusoidal_encoding(sequence_length, d_model, dtype=jnp.float32):
    """Same math as PoisitionwiseFeedForward._get_encoding (interleaved sin/cos)."""
    # TODO(synk): odd d_model also breaks in the PyTorch module (flatten gives
    # 2*ceil(d/2) columns); only even d_model is supported.
    assert d_model % 2 == 0, "sinusoidal encoding requires even d_model"
    pos = jnp.arange(sequence_length, dtype=jnp.float32).reshape(sequence_length, 1)
    i = jnp.arange(0, d_model, 2, dtype=jnp.float32)
    denominator = jnp.power(10000.0, 2.0 * i / d_model)
    even_pe = jnp.sin(pos / denominator)
    odd_pe = jnp.cos(pos / denominator)
    pe = jnp.stack([even_pe, odd_pe], axis=2).reshape(sequence_length, d_model)
    return pe.astype(dtype)


# ---------------------------------------------------------------------------
# Kernels. Grid = (batch, seq_tiles, hidden_tiles); hidden axis is the
# reduction of the second matmul -> accumulate into f32 VMEM scratch.
# ---------------------------------------------------------------------------
def _ffn_body(xv, w1_ref, b1_ref, w2_ref, b2_ref, o_ref, acc_ref):
    h_idx = pl.program_id(2)

    @pl.when(h_idx == 0)
    def _init():
        acc_ref[...] = jnp.zeros_like(acc_ref)

    # First matmul in the MXU dtype (bf16 by default), f32 accumulation.
    h = jnp.dot(xv.astype(w1_ref.dtype), w1_ref[...],
                preferred_element_type=jnp.float32)
    # Bias + ReLU epilogue in f32 (v5e has no bf16 VALU -> f32 is the fast path).
    h = jnp.maximum(h + b1_ref[...], 0.0)
    # TODO(synk): training-mode dropout (pltpu.prng_seed + stateful_bernoulli);
    # eval-mode dropout is the identity, which is what is implemented here.
    acc_ref[...] += jnp.dot(h.astype(w2_ref.dtype), w2_ref[...],
                            preferred_element_type=jnp.float32)

    @pl.when(h_idx == pl.num_programs(2) - 1)
    def _finalize():
        o_ref[...] = (acc_ref[...] + b2_ref[...]).astype(o_ref.dtype)


def _ffn_kernel(x_ref, w1_ref, b1_ref, w2_ref, b2_ref, o_ref, acc_ref):
    _ffn_body(x_ref[...], w1_ref, b1_ref, w2_ref, b2_ref, o_ref, acc_ref)


def _ffn_kernel_pe(pe_ref, x_ref, w1_ref, b1_ref, w2_ref, b2_ref, o_ref, acc_ref):
    # Fused positional-encoding add (f32, matches PyTorch add-before-linear).
    _ffn_body(x_ref[...] + pe_ref[...], w1_ref, b1_ref, w2_ref, b2_ref, o_ref,
              acc_ref)


# ---------------------------------------------------------------------------
# One-time parameter preparation (offline): transpose + pad + dtype cast.
# ---------------------------------------------------------------------------
def prepare_ffn_params(w1, b1, w2, b2, sequence_length, *,
                       compute_dtype=jnp.bfloat16):
    """w1: (hidden, d_model), b1: (hidden,), w2: (d_model, hidden), b2: (d_model,)
    — PyTorch nn.Linear layout. Returns MXU-ready padded operands reused across
    calls so no per-call weight transpose / pad / cast HBM traffic."""
    hidden, d_model = w1.shape
    Dp = _round_up(d_model, _LANE)
    Hp = _round_up(hidden, _LANE)

    w1_t = _maybe_pad(jnp.asarray(w1).T,
                      ((0, Dp - d_model), (0, Hp - hidden))).astype(compute_dtype)
    w2_t = _maybe_pad(jnp.asarray(w2).T,
                      ((0, Hp - hidden), (0, Dp - d_model))).astype(compute_dtype)
    b1p = _maybe_pad(jnp.asarray(b1, jnp.float32), ((0, Hp - hidden),)).reshape(1, Hp)
    b2p = _maybe_pad(jnp.asarray(b2, jnp.float32), ((0, Dp - d_model),)).reshape(1, Dp)
    pe = _maybe_pad(sinusoidal_encoding(sequence_length, d_model),
                    ((0, 0), (0, Dp - d_model)))  # (seq, Dp), f32

    return dict(w1=w1_t, b1=b1p, w2=w2_t, b2=b2p, pe=pe,
                d_model=d_model, hidden=hidden,
                sequence_length=sequence_length, compute_dtype=compute_dtype)


# ---------------------------------------------------------------------------
# Tile-size selection.
# ---------------------------------------------------------------------------
def _choose_seq_tile(seq, tm):
    """Minimize tail over-padding; tiny seq uses round_up(seq, 8)."""
    if seq <= tm:
        return _round_up(seq, _SUBLANE)
    best_pad, best_ts = None, None
    for ts in range(_LANE, tm + 1, _LANE):
        pad = _round_up(seq, ts) - seq
        if best_pad is None or pad < best_pad or (pad == best_pad and ts > best_ts):
            best_pad, best_ts = pad, ts
    return best_ts


def _choose_hidden_tile(Dp, Hp, ts, w_item, x_item, out_item, budget, encode):
    """Largest hidden tile that keeps everything under the VMEM budget."""
    def fits(th, nbuf):
        weights = nbuf * (Dp * th + th * Dp) * w_item + nbuf * th * 4 + Dp * 4
        io = 2 * ts * Dp * (x_item + out_item)         # double-buffered x / out
        if encode:
            io += 2 * ts * Dp * 4                      # pe tile
        scratch = ts * Dp * 4 + ts * th * (4 + w_item)  # acc + f32 h + cast copy
        return weights + io + scratch <= budget

    if fits(Hp, 1):
        return Hp
    th = Hp
    while th > _LANE:
        th = max(_LANE, _round_up(th // 2, _LANE))
        if fits(th, 2) or th == _LANE:
            return th
    return _LANE


# ---------------------------------------------------------------------------
# Forward.
# ---------------------------------------------------------------------------
def positionwise_feed_forward(x, params, *, encode=False, tm=None):
    """x: (batch, seq, d_model); params from prepare_ffn_params."""
    batch, seq, d_model = x.shape
    assert d_model == params["d_model"]
    hidden = params["hidden"]
    out_dtype = x.dtype

    w1p, b1p, w2p, b2p = params["w1"], params["b1"], params["w2"], params["b2"]
    Dp, Hp0 = w1p.shape
    w_item = jnp.dtype(w1p.dtype).itemsize
    x_item = jnp.dtype(x.dtype).itemsize
    out_item = jnp.dtype(out_dtype).itemsize

    # Generation-aware VMEM budgeting (v5e/v6e 128 MiB, v7x 64 MiB per TC).
    vmem_cap = _vmem_capacity_bytes()
    vmem_limit = int(min(vmem_cap * 0.85, 112 * 1024 * 1024))
    if tm is None:
        tm = 512 if vmem_cap >= 96 * 1024 * 1024 else 256

    ts = _choose_seq_tile(seq, tm)
    Sp = _round_up(seq, ts)
    n_s = Sp // ts

    th = _choose_hidden_tile(Dp, Hp0, ts, w_item, x_item, out_item,
                             int(vmem_limit * 0.9), encode)
    Hp = _round_up(Hp0, th)
    n_h = Hp // th
    if Hp != Hp0:
        # Extra hidden columns are zero: relu(0 + 0) @ 0 contributes nothing.
        w1p = jnp.pad(w1p, ((0, 0), (0, Hp - Hp0)))
        w2p = jnp.pad(w2p, ((0, Hp - Hp0), (0, 0)))
        b1p = jnp.pad(b1p, ((0, 0), (0, Hp - Hp0)))

    # Per-call padding of activations only.
    xp = _maybe_pad(x, ((0, 0), (0, Sp - seq), (0, Dp - d_model)))

    # Constant-index (resident) operands don't need a second pipeline buffer.
    w_mode = pl.Buffered(1) if n_h == 1 else None
    in_specs = [
        pl.BlockSpec((None, ts, Dp), lambda b, s, h: (b, s, 0)),               # x tile
        pl.BlockSpec((Dp, th), lambda b, s, h: (0, h), pipeline_mode=w_mode),  # W1
        pl.BlockSpec((1, th), lambda b, s, h: (0, h), pipeline_mode=w_mode),   # b1
        pl.BlockSpec((th, Dp), lambda b, s, h: (h, 0), pipeline_mode=w_mode),  # W2
        pl.BlockSpec((1, Dp), lambda b, s, h: (0, 0),
                     pipeline_mode=pl.Buffered(1)),                            # b2
    ]
    args = [xp, w1p, b1p, w2p, b2p]
    kernel = _ffn_kernel

    if encode:
        pe = params["pe"]
        assert pe.shape[0] == seq, "encode=True requires seq == sequence_length"
        pep = _maybe_pad(pe, ((0, Sp - seq), (0, 0))).astype(x.dtype)
        in_specs = [pl.BlockSpec((ts, Dp), lambda b, s, h: (s, 0))] + in_specs
        args = [pep] + args
        kernel = _ffn_kernel_pe

    M = batch * seq
    cost = pl.CostEstimate(
        flops=4 * M * d_model * hidden,
        transcendentals=0,
        bytes_accessed=(x_item + out_item) * M * d_model
        + w_item * 2 * d_model * hidden + 4 * (hidden + d_model),
    )

    # TODO(synk): when calling this per layer, prefetch the next layer's padded
    # bf16 weights across calls (P10 cross-pallas_call DMA future) to hide the
    # first-iteration W1+W2 DMA.
    out = pl.pallas_call(
        kernel,
        out_shape=jax.ShapeDtypeStruct((batch, Sp, Dp), out_dtype),
        grid_spec=pltpu.PrefetchScalarGridSpec(
            num_scalar_prefetch=0,
            grid=(batch, n_s, n_h),
            in_specs=in_specs,
            out_specs=pl.BlockSpec((None, ts, Dp), lambda b, s, h: (b, s, 0)),
            scratch_shapes=[pltpu.VMEM((ts, Dp), jnp.float32)],
        ),
        compiler_params=pltpu.CompilerParams(
            dimension_semantics=("parallel", "parallel", "arbitrary"),
            vmem_limit_bytes=vmem_limit,
        ),
        cost_estimate=cost,
    )(*args)

    if Sp != seq or Dp != d_model:
        out = out[:, :seq, :d_model]
    return out


if __name__ == "__main__":
    # Small but lane-dense shapes consistent with the module.
    batch = 2
    seq = 8            # sequence_length
    d_model = 128
    hidden = 256

    key = jax.random.PRNGKey(0)
    kx, kw1, kb1, kw2, kb2 = jax.random.split(key, 5)

    x = jax.random.normal(kx, (batch, seq, d_model), dtype=jnp.float32)

    # nn.Linear-style params in PyTorch layout: weight (out, in), bias (out,)
    bound1 = 1.0 / math.sqrt(d_model)
    w1 = jax.random.uniform(kw1, (hidden, d_model), minval=-bound1, maxval=bound1,
                            dtype=jnp.float32)
    b1 = jax.random.uniform(kb1, (hidden,), minval=-bound1, maxval=bound1,
                            dtype=jnp.float32)
    bound2 = 1.0 / math.sqrt(hidden)
    w2 = jax.random.uniform(kw2, (d_model, hidden), minval=-bound2, maxval=bound2,
                            dtype=jnp.float32)
    b2 = jax.random.uniform(kb2, (d_model,), minval=-bound2, maxval=bound2,
                            dtype=jnp.float32)

    def reference(xin, encode):
        if encode:
            xin = xin + sinusoidal_encoding(seq, d_model)[None, :, :]
        h = jnp.maximum(xin @ w1.T + b1, 0.0)
        return h @ w2.T + b2   # dropout is identity in eval mode

    # Default bf16 MXU path (f32 accumulation); tolerance reflects bf16 rounding.
    params_bf16 = prepare_ffn_params(w1, b1, w2, b2, seq)
    out = jax.block_until_ready(positionwise_feed_forward(x, params_bf16, encode=False))
    assert out.shape == (batch, seq, d_model)
    assert jnp.allclose(out, reference(x, False), atol=3e-2, rtol=3e-2)

    out_pe = jax.block_until_ready(positionwise_feed_forward(x, params_bf16, encode=True))
    assert jnp.allclose(out_pe, reference(x, True), atol=3e-2, rtol=3e-2)

    # f32 compute path: validates kernel structure at tighter tolerance.
    params_f32 = prepare_ffn_params(w1, b1, w2, b2, seq, compute_dtype=jnp.float32)
    out_f32 = jax.block_until_ready(positionwise_feed_forward(x, params_f32, encode=True))
    assert jnp.allclose(out_f32, reference(x, True), atol=5e-3, rtol=5e-3)

    print("KERNEL_OK")
</pallas_src>

<mosaic_0001>
module attributes {stable_mosaic.version = 11 : i64} {
  func.func @_ffn_kernel(%arg0: i32, %arg1: i32, %arg2: i32, %arg3: memref<1x8x128xf32, #tpu.memory_space<vmem>>, %arg4: memref<128x256xbf16, #tpu.memory_space<vmem>>, %arg5: memref<1x256xf32, #tpu.memory_space<vmem>>, %arg6: memref<256x128xbf16, #tpu.memory_space<vmem>>, %arg7: memref<1x128xf32, #tpu.memory_space<vmem>>, %arg8: memref<1x8x128xf32, #tpu.memory_space<vmem>>, %arg9: memref<8x128xf32, #tpu.memory_space<vmem>>) attributes {dimension_semantics = [#tpu.dimension_semantics<parallel>, #tpu.dimension_semantics<parallel>, #tpu.dimension_semantics<arbitrary>], iteration_bounds = array<i64: 2, 1, 1>, scalar_prefetch = 0 : i64, scratch_operands = 1 : i64, tpu.core_type = #tpu.core_type<tc>, window_params = [{transform_indices = @transform_0, window_bounds = array<i64: 1, 8, 128>}, {pipeline_mode = #tpu.pipeline_mode<synchronous>, transform_indices = @transform_1, window_bounds = array<i64: 128, 256>}, {pipeline_mode = #tpu.pipeline_mode<synchronous>, transform_indices = @transform_2, window_bounds = array<i64: 1, 256>}, {pipeline_mode = #tpu.pipeline_mode<synchronous>, transform_indices = @transform_3, window_bounds = array<i64: 256, 128>}, {pipeline_mode = #tpu.pipeline_mode<synchronous>, transform_indices = @transform_4, window_bounds = array<i64: 1, 128>}, {transform_indices = @transform_5, window_bounds = array<i64: 1, 8, 128>}]} {
    %c0 = arith.constant 0 : index
    %c0_0 = arith.constant 0 : index
    %c0_1 = arith.constant 0 : index
    %0 = vector.load %arg3[%c0, %c0_0, %c0_1] : memref<1x8x128xf32, #tpu.memory_space<vmem>>, vector<1x8x128xf32>
    %1 = vector.shape_cast %0 : vector<1x8x128xf32> to vector<8x128xf32>
    %c0_i32 = arith.constant 0 : i32
    %2 = arith.cmpi eq, %arg2, %c0_i32 : i32
    %3 = arith.extui %2 : i1 to i32
    %c0_i32_2 = arith.constant 0 : i32
    %4 = arith.cmpi ne, %3, %c0_i32_2 : i32
    scf.if %4 {
      %cst_17 = arith.constant 0.000000e+00 : f32
      %22 = vector.broadcast %cst_17 : f32 to vector<8x128xf32>
      %c0_18 = arith.constant 0 : index
      %c0_19 = arith.constant 0 : index
      %23 = vector.load %arg9[%c0_18, %c0_19] : memref<8x128xf32, #tpu.memory_space<vmem>>, vector<8x128xf32>
      tpu.vector_store %arg9[%c0_18, %c0_19], %22 {strides = array<i32>} : memref<8x128xf32, #tpu.memory_space<vmem>>, vector<8x128xf32>,
    } else {
    }
    %5 = arith.truncf %1 : vector<8x128xf32> to vector<8x128xbf16>
    %c0_3 = arith.constant 0 : index
    %c0_4 = arith.constant 0 : index
    %6 = vector.load %arg4[%c0_3, %c0_4] : memref<128x256xbf16, #tpu.memory_space<vmem>>, vector<128x256xbf16>
    %cst = arith.constant dense<0.000000e+00> : vector<8x256xf32>
    %7 = tpu.matmul %5, %6, %cst {dimension_numbers = #tpu.dot_dimension_numbers<[1], [0], [0], [1], [0, 0, 1, 1], [], []>} : vector<8x128xbf16>, vector<128x256xbf16>, vector<8x256xf32> -> vector<8x256xf32>
    %c0_5 = arith.constant 0 : index
    %c0_6 = arith.constant 0 : index
    %8 = vector.load %arg5[%c0_5, %c0_6] : memref<1x256xf32, #tpu.memory_space<vmem>>, vector<1x256xf32>
    %9 = vector.broadcast %8 : vector<1x256xf32> to vector<8x256xf32>
    %10 = arith.addf %7, %9 : vector<8x256xf32>
    %cst_7 = arith.constant 0.000000e+00 : f32
    %11 = vector.broadcast %cst_7 : f32 to vector<8x256xf32>
    %12 = arith.maximumf %10, %11 : vector<8x256xf32>
    %c0_8 = arith.constant 0 : index
    %c0_9 = arith.constant 0 : index
    %13 = vector.load %arg9[%c0_8, %c0_9] : memref<8x128xf32, #tpu.memory_space<vmem>>, vector<8x128xf32>
    %14 = arith.truncf %12 : vector<8x256xf32> to vector<8x256xbf16>
    %c0_10 = arith.constant 0 : index
    %c0_11 = arith.constant 0 : index
    %15 = vector.load %arg6[%c0_10, %c0_11] : memref<256x128xbf16, #tpu.memory_space<vmem>>, vector<256x128xbf16>
    %cst_12 = arith.constant dense<0.000000e+00> : vector<8x128xf32>
    %16 = tpu.matmul %14, %15, %cst_12 {dimension_numbers = #tpu.dot_dimension_numbers<[1], [0], [0], [1], [0, 0, 1, 1], [], []>} : vector<8x256xbf16>, vector<256x128xbf16>, vector<8x128xf32> -> vector<8x128xf32>
    %17 = arith.addf %13, %16 : vector<8x128xf32>
    %c0_13 = arith.constant 0 : index
    %c0_14 = arith.constant 0 : index
    %18 = vector.load %arg9[%c0_13, %c0_14] : memref<8x128xf32, #tpu.memory_space<vmem>>, vector<8x128xf32>
    tpu.vector_store %arg9[%c0_13, %c0_14], %17 {strides = array<i32>} : memref<8x128xf32, #tpu.memory_space<vmem>>, vector<8x128xf32>,
    %c0_i32_15 = arith.constant 0 : i32
    %19 = arith.cmpi eq, %arg2, %c0_i32_15 : i32
    %20 = arith.extui %19 : i1 to i32
    %c0_i32_16 = arith.constant 0 : i32
    %21 = arith.cmpi ne, %20, %c0_i32_16 : i32
    scf.if %21 {
      %c0_17 = arith.constant 0 : index
      %c0_18 = arith.constant 0 : index
      %22 = vector.load %arg9[%c0_17, %c0_18] : memref<8x128xf32, #tpu.memory_space<vmem>>, vector<8x128xf32>
      %c0_19 = arith.constant 0 : index
      %c0_20 = arith.constant 0 : index
      %23 = vector.load %arg7[%c0_19, %c0_20] : memref<1x128xf32, #tpu.memory_space<vmem>>, vector<1x128xf32>
      %24 = vector.broadcast %23 : vector<1x128xf32> to vector<8x128xf32>
      %25 = arith.addf %22, %24 : vector<8x128xf32>
      %c0_21 = arith.constant 0 : index
      %c0_22 = arith.constant 0 : index
      %c0_23 = arith.constant 0 : index
      %26 = vector.load %arg8[%c0_21, %c0_22, %c0_23] : memref<1x8x128xf32, #tpu.memory_space<vmem>>, vector<1x8x128xf32>
      %27 = vector.shape_cast %26 : vector<1x8x128xf32> to vector<8x128xf32>
      %28 = vector.shape_cast %25 : vector<8x128xf32> to vector<1x8x128xf32>
      tpu.vector_store %arg8[%c0_21, %c0_22, %c0_23], %28 {strides = array<i32>} : memref<1x8x128xf32, #tpu.memory_space<vmem>>, vector<1x8x128xf32>,
    } else {
    }
    return
  }
  func.func @transform_0(%arg0: i32, %arg1: i32, %arg2: i32) -> (i32, i32, i32) {
    %c0_i32 = arith.constant 0 : i32
    %c0_i32_0 = arith.constant 0 : i32
    return %arg0, %arg1, %c0_i32 : i32, i32, i32
  }
  func.func @transform_1(%arg0: i32, %arg1: i32, %arg2: i32) -> (i32, i32) {
    %c0_i32 = arith.constant 0 : i32
    %c0_i32_0 = arith.constant 0 : i32
    return %c0_i32, %arg2 : i32, i32
  }
  func.func @transform_2(%arg0: i32, %arg1: i32, %arg2: i32) -> (i32, i32) {
    %c0_i32 = arith.constant 0 : i32
    %c0_i32_0 = arith.constant 0 : i32
    return %c0_i32, %arg2 : i32, i32
  }
  func.func @transform_3(%arg0: i32, %arg1: i32, %arg2: i32) -> (i32, i32) {
    %c0_i32 = arith.constant 0 : i32
    %c0_i32_0 = arith.constant 0 : i32
    return %arg2, %c0_i32 : i32, i32
  }
  func.func @transform_4(%arg0: i32, %arg1: i32, %arg2: i32) -> (i32, i32) {
    %c0_i32 = arith.constant 0 : i32
    %c0_i32_0 = arith.constant 0 : i32
    %c0_i32_1 = arith.constant 0 : i32
    return %c0_i32, %c0_i32_0 : i32, i32
  }
  func.func @transform_5(%arg0: i32, %arg1: i32, %arg2: i32) -> (i32, i32, i32) {
    %c0_i32 = arith.constant 0 : i32
    %c0_i32_0 = arith.constant 0 : i32
    return %arg0, %arg1, %c0_i32 : i32, i32, i32
  }
}

</mosaic_0001>

<bundles_post_ra>
// kernel: tpu_custom_call.1
= control target key start
LH: loop header
LB: loop body
LE: loop exit
PB: predicated region body
PF: predicated region fallthrough
CT: control target
= control target key end

     0   :  { %10 = vsyncpa [#allocation4], 0  ;;  %s1484_s0 = inlined_call_operand.hbm [shape: f32[2,8,128], index: 0, kind: input, shape index: {}]   ;;  %s1485_s1 = inlined_call_operand.hbm [shape: bf16[128,256], index: 1, kind: input, shape index: {}]   ;;  %s1486_s2 = inlined_call_operand.hbm [shape: f32[1,256], index: 2, kind: input, shape index: {}]   ;;  %s1487_s3 = inlined_call_operand.hbm [shape: bf16[256,128], index: 3, kind: input, shape index: {}]   ;;  %s1488_s4 = inlined_call_operand.vmem [shape: f32[1,128], index: 4, kind: input, shape index: {}]   ;;  %s1489_s5 = inlined_call_operand.hbm [shape: f32[2,8,128], index: 5, kind: output, shape index: {}]  }
   0x1   :  { %12 = vsyncpa [#allocation4 + $0x1], 0 }
   0x2   :  { %13 = vsyncpa [#allocation7], 0 }
   0x3   :  { %14 = vsyncpa [#allocation10], 0 }
   0x4   :  { %15 = vsyncpa [#allocation5], 0 }
   0x5   :  { %17 = vsyncpa [#allocation5 + $0x1], 0  ;;  %s1307_s18 = smov 0   ;;  %s1309_s19 = smov 0  }
   0x6   :  { %s1311_s20 = smov 0   ;;  %s1313_s21 = smov 0  }
   0x7   :  { %s1315_s22 = smov 0   ;;  %s1317_s23 = smov 0  }
   0x8 LB: > { %s781_s24 = sadd.s32 4294967295, %s1268_s23   ;;  %p783_p0 = scmp.ge.s32.totalorder %s1268_s23, 1  ;;  %s1268_s23 = sphi %s1317_s23, %s23_s23   ;;  %s1264_s22 = sphi %s1315_s22, %s1501_s22   ;;  %s1260_s21 = sphi %s1313_s21, %s1500_s21   ;;  %s1256_s20 = sphi %s1311_s20, %s1499_s20   ;;  %s1252_s19 = sphi %s1309_s19, %s1498_s19   ;;  %s1248_s18 = sphi %s1307_s18, %s1497_s18  }
   0x9   : > { %p1341_p1 = scmp.eq.s32.totalorder %s781_s24, 0  ;;  %p202_p2 = scmp.lt.s32.totalorder %s1268_s23, 3 }
   0xa   : > { %s216_s28 = sshll.u32 %s1485_s1, 4  ;;  %s1270_s30 = smov [#allocation6]   ;;  %s217_s28 = int_to_ptr.hbm [resolvable:$true] %s216_s28 }
   0xb   : > { %p1349_p3 = pnand %p783_p0, %p202_p2  ;;  %s218_s6 = sshll.u32 %s1270_s30, 4  ;;  %s219_s6 = int_to_ptr.vmem [resolvable:$true] %s218_s6 }
   0xc   : > { %p787_p6 = scmp.ge.s32.totalorder %s1268_s23, 2  ;;  %s233_s10 = sshll.u32 %s1486_s2, 4  ;;  %s234_s10 = int_to_ptr.hbm [resolvable:$true] %s233_s10 }
   0xd   : > { %p976_p4 = pneg %p1349_p3  ;;  %s1271_s11 = smov 128  }
   0xe   : > { %s1272_s12 = smov 8   ;;  %s1273_s13 = smov [#allocation8]  }
   0xf   : > { %p1357_p5 = pnand %p976_p4, %p1341_p1  ;;  %s235_s14 = sshll.u32 %s1273_s13, 4  ;;  %s236_s14 = int_to_ptr.vmem [resolvable:$true] %s235_s14 }
  0x10   : > { %s247_s17 = sshll.u32 %s1487_s3, 4  ;;  %s1274_s26 = smov [#allocation9]   ;;  %s248_s17 = int_to_ptr.hbm [resolvable:$true] %s247_s17 }
  0x11   : > { %979 = dma.hbm_to_vmem [thread:$0]  (!%p1357_p5), %s217_s28, 2048, %s219_s6, [#allocation7], %s1271_s11, %s1271_s11, %s1272_s12  }
  0x12   : > { %982 = dma.hbm_to_vmem [thread:$0]  (!%p1357_p5), %s234_s10, 32, %s236_s14, [#allocation7]  }
  0x13   : > { %s249_s27 = sshll.u32 %s1274_s26, 4  ;;  %s1275_s28 = smov 64   ;;  %s250_s27 = int_to_ptr.vmem [resolvable:$true] %s249_s27 }
  0x14   : > { %s1276_s30 = smov 4   ;;  %s782_s6 = sadd.s32 4294967294, %s1268_s23  }
  0x15   : > { %985 = dma.hbm_to_vmem [thread:$0]  (!%p1357_p5), %s248_s17, 2048, %s250_s27, [#allocation10], %s1275_s28, %s1275_s28, %s1276_s30  }
  0x16   : > { %s42_s8 = sadd.s32 1, %s1264_s22  ;;  %s51_s9 = sadd.s32 1, %s1256_s20 }
  0x17   : > { %p44_p7 = scmp.ge.s32.totalorder %s42_s8, 2  ;;  %p58_p8 = scmp.ne.s32.totalorder %s1256_s20, %s1252_s19 }
  0x18   : > { %p59_p9 = scmp.eq.s32.totalorder %s1268_s23, 0  ;;  %p64_p10 = scmp.ne.s32.totalorder %s1252_s19, %s1248_s18 }
  0x19   : > { %s1503_s8 = smov (%p44_p7, %s42_s8), 0  ;;  %p189_p13 = scmp.eq.s32.totalorder %s781_s24, 1 }
  0x1a   : > { %p1384_p11 = por %p59_p9, %p58_p8  ;;  %p1390_p12 = por %p1341_p1, %p64_p10 }
  0x1b   : > { %s46_s11 = ssub.s32 %s1264_s22, %s1503_s8  ;;  %p195_p2 = scmp.eq.s32.totalorder %s782_s6, 1 }
  0x1c   : > { %p49_p0 = scmp.eq.s32.totalorder %s46_s11, 0  ;;  %p1398_p4 = por %p189_p13, %p58_p8 }
  0x1d   : > { %p997_p5 = scmp.lt.s32.totalorder %s1268_s23, 2  ;;  %p1406_p7 = por %p195_p2, %p64_p10 }
  0x1e   : > { %s1404_s13 = scalar_select %p49_p0, %s1256_s20, %s51_s9  }
  0x1f   : > { %s266_s15 = sand.u32 1, %s1256_s20   ;;  %s789_s17 = sshll.u32 %s1264_s22, 3 }
  0x20   : > { %s788_s16 = sshll.u32 %s266_s15, 3  ;;  %s275_s24 = scalar_lea.hbm %s1484_s0, %s789_s17 }
  0x21   : > { %s270_s28 = scalar_lea.vmem [#allocation3], %s788_s16  ;;  %s277_s6 = sshll.u32 %s275_s24, 4  ;;  %s278_s6 = int_to_ptr.hbm [resolvable:$true] %s277_s6 }
  0x22   : > { %s279_s30 = sshll.u32 %s270_s28, 4  ;;  %p987_p8 = pnand %p997_p5, %p1384_p11  ;;  %s280_s30 = int_to_ptr.vmem [resolvable:$true] %s279_s30 }
  0x23   : > { %s267_s9 = scalar_lea.sflag [#allocation4], %s266_s15  ;;  %288 = sbr.rel (%p1349_p3) target bundleno = 352 (0x160), region = 40 }
  0x24   : > { %989 = dma.hbm_to_vmem [thread:$0]  (!%p987_p8), %s278_s6, 128, %s280_s30, %s267_s9  }
  0x25   : > { %s1420_s11 = sand.u32 (!%p1349_p3), 1, %s1252_s19  }
  0x26   : > { %s791_s17 = sshll.u32 (!%p1349_p3), %s1420_s11, 3  ;;  %s291_s16 = scalar_lea.sflag (!%p1349_p3), [#allocation4], %s1420_s11 }
  0x27   : > { %s1426_s26 = scalar_lea.vmem (!%p1349_p3), [#allocation3], %s791_s17 }
  0x28   : > { %1231 = dma.done.wait (%p1390_p12), %s291_s16, 128  }
  0x29   : > { %1233 = vsyncadd (%p1390_p12), %s291_s16, 4294967168 }
  0x2a   : > { %1235 = dma.done.wait (%p1341_p1), [#allocation7], 2080  }
  0x2b   : > { %1237 = vsyncadd (%p1341_p1), [#allocation7], 4294965216 }
  0x2c   : > { %1239 = dma.done.wait (%p1341_p1), [#allocation10], 2048  }
  0x2d   : > { %1241 = vsyncadd (%p1341_p1), [#allocation10], 4294965248  ;;  %v854_v0 = vld [vmem:[#allocation6 + $0x70] sm:$0xf]  ;;  %v943_v1 = vld [vmem:[#allocation6 + $0x74] sm:$0xf0] }
  0x2e   : > { %v942_v2 = vld [vmem:[#allocation6 + $0x74] sm:$0xf]  ;;  %v855_v3 = vor.u32 %v943_v1, %v854_v0  ;;  %v856_v4 = vld [vmem:[#allocation6 + $0x78] sm:$0xf0]  ;;  %v846_v5 = vld [vmem:[#allocation6 + $0x60] sm:$0xf] }
  0x2f   : > { %v941_v6 = vld [vmem:[#allocation6 + $0x64] sm:$0xf0]  ;;  %v859_v7 = vor.u32 %v942_v2, %v856_v4  ;;  %v940_v8 = vld [vmem:[#allocation6 + $0x64] sm:$0xf]  ;;  %v848_v9 = vld [vmem:[#allocation6 + $0x68] sm:$0xf0] }
  0x30   : > { %449 = vmatpush.bf16.msra.mxu0 %v855_v3  ;;  %v847_v10 = vor.u32 %v941_v6, %v846_v5  ;;  %v851_v11 = vor.u32 %v940_v8, %v848_v9  ;;  %v838_v12 = vld [vmem:[#allocation6 + $0x50] sm:$0xf]  ;;  %v939_v13 = vld [vmem:[#allocation6 + $0x54] sm:$0xf0]  ;;  %v938_v14 = vld [vmem:[#allocation6 + $0x54] sm:$0xf] }
  0x31   : > { %462 = vmatpush.bf16.msra.mxu1 %v859_v7  ;;  %v840_v15 = vld [vmem:[#allocation6 + $0x58] sm:$0xf0]  ;;  %v839_v16 = vor.u32 %v939_v13, %v838_v12  ;;  %v830_v18 = vld [vmem:[#allocation6 + $0x40] sm:$0xf]  ;;  %v937_v19 = vld [vmem:[#allocation6 + $0x44] sm:$0xf0] }
  0x32   : > { %v843_v17 = vor.u32 %v938_v14, %v840_v15  ;;  %v936_v20 = vld [vmem:[#allocation6 + $0x44] sm:$0xf]  ;;  %v832_v21 = vld [vmem:[#allocation6 + $0x48] sm:$0xf0]  ;;  %v831_v22 = vor.u32 %v937_v19, %v830_v18  ;;  %v951_v23 = vld [vmem:[#allocation9 + $0x38] sm:$0xff]  ;;  %s925_s25 = sshll.u32 %s1260_s21, 3 }
  0x33   : > { %v959_v24 = vld [vmem:[#allocation9 + $0x78] sm:$0xff]  ;;  %v835_v25 = vor.u32 %v936_v20, %v832_v21  ;;  %v822_v26 = vld [vmem:[#allocation6 + $0x30] sm:$0xf]  ;;  %v934_v28 = vld [vmem:[#allocation6 + $0x34] sm:$0xf]  ;;  %608 = vmatpush.bf16.msra.mxu2 %v951_v23  ;;  %s658_s7 = scalar_lea.hbm %s1489_s5, %s925_s25  ;;  %s336_s24 = scalar_lea.vmem [#allocation11], %s791_s17 }
  0x34   : > { %450 = vmatpush.bf16.msra.mxu0 %v847_v10  ;;  %v935_v27 = vld [vmem:[#allocation6 + $0x34] sm:$0xf0]  ;;  %v824_v29 = vld [vmem:[#allocation6 + $0x38] sm:$0xf0]  ;;  %621 = vmatpush.bf16.msra.mxu3 %v959_v24  ;;  %v814_v34 = vld [vmem:[#allocation6 + $0x20] sm:$0xf] }
  0x35   : > { %463 = vmatpush.bf16.msra.mxu1 %v851_v11  ;;  %v950_v30 = vld [vmem:[#allocation9 + $0x30] sm:$0xff]  ;;  %v823_v32 = vor.u32 %v935_v27, %v822_v26  ;;  %v827_v33 = vor.u32 %v934_v28, %v824_v29  ;;  %v933_v35 = vld [vmem:[#allocation6 + $0x24] sm:$0xf0]  ;;  %v932_v36 = vld [vmem:[#allocation6 + $0x24] sm:$0xf]  ;;  %s660_s28 = sshll.u32 %s336_s24, 4  ;;  %s661_s28 = int_to_ptr.vmem [resolvable:$true] %s660_s28 }
  0x36   : > { %v958_v31 = vld [vmem:[#allocation9 + $0x70] sm:$0xff]  ;;  %v816_v37 = vld [vmem:[#allocation6 + $0x28] sm:$0xf0]  ;;  %v815_v40 = vor.u32 %v933_v35, %v814_v34  ;;  %v808_v45 = vld [vmem:[#allocation6 + $0x18] sm:$0xf0]  ;;  %s662_s30 = sshll.u32 %s658_s7, 4  ;;  %s663_s30 = int_to_ptr.hbm [resolvable:$true] %s662_s30 }
  0x37   : > { %609 = vmatpush.bf16.msra.mxu2 %v950_v30  ;;  %v949_v38 = vld [vmem:[#allocation9 + $0x28] sm:$0xff]  ;;  %v819_v41 = vor.u32 %v932_v36, %v816_v37  ;;  %v931_v43 = vld [vmem:[#allocation6 + $0x14] sm:$0xf0]  ;;  %v930_v44 = vld [vmem:[#allocation6 + $0x14] sm:$0xf]  ;;  %s647_s21 = scalar_lea.sflag [#allocation5], %s1420_s11 }
  0x38   : > { %451 = vmatpush.bf16.msra.mxu0 %v839_v16  ;;  %622 = vmatpush.bf16.msra.mxu3 %v958_v31  ;;  %v957_v39 = vld [vmem:[#allocation9 + $0x68] sm:$0xff]  ;;  %v948_v46 = vld [vmem:[#allocation9 + $0x20] sm:$0xff]  ;;  %v811_v49 = vor.u32 %v930_v44, %v808_v45  ;;  %v947_v54 = vld [vmem:[#allocation9 + $0x18] sm:$0xff]  ;;  %s1192_s6 = sshra.s32 %s663_s30, 4  ;;  %s1198_s25 = scalar_lea.hbm %s1489_s5, 16  ;;  %s1193_s6 = int_to_ptr.hbm [resolvable:$true] %s1192_s6 }
  0x39   : > { %464 = vmatpush.bf16.msra.mxu1 %v843_v17  ;;  %v806_v42 = vld [vmem:[#allocation6 + $0x10] sm:$0xf]  ;;  %v956_v47 = vld [vmem:[#allocation9 + $0x60] sm:$0xff]  ;;  %v800_v53 = vld [vmem:[#allocation6 + $0x8] sm:$0xf0]  ;;  %s1194_s9 = scalar_lea.hbm %s1193_s6, 8  ;;  %p1199_p10 = scmp.lt.s32.totalorder %s1193_s6, %s1489_s5 }
  0x3a   : > { %v807_v48 = vor.u32 %v931_v43, %v806_v42  ;;  %v798_v50 = vld [vmem:[#allocation6] sm:$0xf]  ;;  %v929_v51 = vld [vmem:[#allocation6 + $0x4] sm:$0xf0]  ;;  %v928_v52 = vld [vmem:[#allocation6 + $0x4] sm:$0xf]  ;;  %p1195_p1 = scmp.ne.s32.totalorder %s1193_s6, %s1194_s9  ;;  %p1200_p11 = scmp.lt.s32.totalorder %s1198_s25, %s1194_s9 }
  0x3b   : > { %610 = vmatpush.bf16.msra.mxu2 %v949_v38  ;;  %v955_v55 = vld [vmem:[#allocation9 + $0x58] sm:$0xff]  ;;  %v799_v56 = vor.u32 %v929_v51, %v798_v50  ;;  %v803_v58 = vor.u32 %v928_v52, %v800_v53  ;;  %v946_v59 = vld [vmem:[#allocation9 + $0x10] sm:$0xff]  ;;  %v945_v62 = vld [vmem:[#allocation9 + $0x8] sm:$0xff] }
  0x3c   : > { %452 = vmatpush.bf16.msra.mxu0 %v831_v22  ;;  %623 = vmatpush.bf16.msra.mxu3 %v957_v39  ;;  %v340_v57 = vld [vmem:[%s1426_s26] sm:$0xff]  ;;  %v944_v0 = vld [vmem:[#allocation9] sm:$0xff]  ;;  %v363_v2 = vld [vmem:[#allocation8] sm:$0x3]  ;;  %p1196_p3 = pnand %p1195_p1, %p1398_p4  ;;  %p1201_p12 = por %p1200_p11, %p1199_p10 }
  0x3d   : > { %465 = vmatpush.bf16.msra.mxu1 %v835_v25  ;;  %v954_v60 = vld [vmem:[#allocation9 + $0x50] sm:$0xff]  ;;  %v346_v61 = vpack.c.bf16 %v340_v57, %v340_v57  ;;  %v953_v63 = vld [vmem:[#allocation9 + $0x48] sm:$0xff]  ;;  %v952_v1 = vld [vmem:[#allocation9 + $0x40] sm:$0xff]  ;;  %v365_v3 = vperm.slane %v363_v2, 0  ;;  %v366_v4 = vperm.slane %v363_v2, 1 }
  0x3e   : > { %v1057_v16 = vld [vmem:[%s1488_s4] ss:$0 sm:$0xff]  ;;  %p1197_p9 = pneg %p1196_p3 }
  0x3f   : > { %611 = vmatpush.bf16.msra.mxu2 %v948_v46 }
  0x40   : > { %453 = vmatpush.bf16.msra.mxu0 %v823_v32  ;;  %624 = vmatpush.bf16.msra.mxu3 %v956_v47  ;;  %p1202_p13 = pnand %p1201_p12, %p1197_p9 }
  0x41   : > { %466 = vmatpush.bf16.msra.mxu1 %v827_v33 }
  0x43   : > { %612 = vmatpush.bf16.msra.mxu2 %v947_v54 }
  0x44   : > { %454 = vmatpush.bf16.msra.mxu0 %v815_v40  ;;  %625 = vmatpush.bf16.msra.mxu3 %v955_v55 }
  0x45   : > { %467 = vmatpush.bf16.msra.mxu1 %v819_v41 }
  0x47   : > { %613 = vmatpush.bf16.msra.mxu2 %v946_v59 }
  0x48   : > { %455 = vmatpush.bf16.msra.mxu0 %v807_v48  ;;  %626 = vmatpush.bf16.msra.mxu3 %v954_v60 }
  0x49   : > { %468 = vmatpush.bf16.msra.mxu1 %v811_v49 }
  0x4b   : > { %614 = vmatpush.bf16.msra.mxu2 %v945_v62 }
  0x4c   : > { %456 = vmatpush.bf16.msra.mxu0 %v799_v56  ;;  %627 = vmatpush.bf16.msra.mxu3 %v953_v63 }
  0x4d   : > { %469 = vmatpush.bf16.msra.mxu1 %v803_v58 }
  0x4f   : > { %457 = vmatmul.bf16.vlgmr.msra.gmra.mxu0 %v346_v61  ;;  %615 = vmatpush.bf16.msra.mxu2 %v944_v0 }
  0x50   : > { %470 = vmatmul.bf16.vlgmr.msra.gmra.mxu1 %v346_v61  ;;  %628 = vmatpush.bf16.msra.mxu3 %v952_v1 }
  0xcc   : > { %v458_v5 = vpop.f32.mrf.mxu0 }
  0xcd   : > { %v459_v6 = vadd.f32 %v458_v5, %v365_v3  ;;  %v471_v7 = vpop.f32.mrf.mxu1 }
  0xce   : > { %v472_v8 = vadd.f32 %v471_v7, %v366_v4 }
  0xcf   : > { %v475_v9 = vmax.f32 %v459_v6, 0.0 }
  0xd0   : > { %v476_v10 = vmax.f32 %v472_v8, 0.0 }
  0xd1   : > { %v478_v11 = vpack.c.bf16 %v475_v9, %v475_v9 }
  0xd2   : > { %v479_v12 = vpack.c.bf16 %v476_v10, %v476_v10 }
  0xd3   : > { %616 = vmatmul.bf16.vlgmr.msra.gmra.mxu2 %v478_v11 }
  0xd4   : > { %629 = vmatmul.bf16.vlgmr.msra.gmra.mxu3 %v479_v12  ;;  %v460_v13 = vpop.f32.mrf.mxu0 }
  0xd5   : > { %v473_v14 = vpop.f32.mrf.mxu1 }
 0x156   : > { %v617_v15 = vpop.f32.mrf.mxu2 }
 0x157   : > { %v630_v17 = vpop.f32.mrf.mxu3 }
 0x158   : > { %v631_v18 = vadd.f32 %v630_v17, %v617_v15 }
 0x15a   : > { %v644_v19 = vadd.f32 %v1057_v16, %v631_v18 }
 0x15c   : > { %645 = vst [vmem:[%s336_s24] sm:$0xff] %v644_v19 }
 0x15d   : > { %1205 = shalt.err (!%p1202_p13)
}
 0x15e   : > { %974 = dma.vmem_to_hbm [thread:$0]  (%p1398_p4), %s661_s28, 128, %s663_s30, %s647_s21   ;;  %v619_v20 = vpop.f32.mrf.mxu2 }
 0x15f   : > { %v632_v21 = vpop.f32.mrf.mxu3 }
 0x160 PF: > { %s674_s11 = sand.u32 1, %s1248_s18   ;;  %p991_p0 = pnand %p787_p6, %p1406_p7 }
 0x161   : > { %s675_s10 = scalar_lea.sflag [#allocation5], %s674_s11 }
 0x162   : > { %p992_p2 = pneg %p991_p0 }
 0x164   : > { %1243 = dma.done.wait (%p992_p2), %s675_s10, 128  }
 0x165   : > { %1245 = vsyncadd (%p992_p2), %s675_s10, 4294967168  ;;  %s23_s23 = sadd.s32 1, %s1268_s23   ;;  %s1497_s18 = smov %s1252_s19 }
 0x166   : > { %p20_p5 = scmp.ge.s32.totalorder %s23_s23, 4   ;;  %s1498_s19 = smov %s1256_s20 }
 0x167   : > { %s1499_s20 = smov %s1404_s13  ;;  %s1500_s21 = smov %s1264_s22 }
 0x168   : > { %s1501_s22 = smov %s1503_s8  ;;  %22 = sbr.rel (!%p20_p5) target bundleno = 8 (0x8), region = 108 }
 0x16d   :  { %681 = vsyncpa [#allocation4], 1 }
 0x16e   :  { %683 = vsyncpa [#allocation4 + $0x1], 1 }
 0x16f   :  { %684 = vsyncpa [#allocation7], 1 }
 0x170   :  { %685 = vsyncpa [#allocation10], 1 }
 0x171   :  { %686 = vsyncpa [#allocation5], 1 }
 0x172   :  { %688 = vsyncpa [#allocation5 + $0x1], 1 }

</bundles_post_ra>
